<compile_context>
chip_gen: v7x
topology: tpu7x:2x2x1
jax: 0.10.0
libtpu: 0.0.40
codegen_flags: <defaults>
</compile_context>

<pallas_src>
import jax
import jax.numpy as jnp
from jax.experimental import pallas as pl
from jax.experimental.pallas import tpu as pltpu


_LANE = 128                      # lane-axis granularity (last dim)
_SUBLANE = 8                     # sublane granularity (second-to-last dim)
_SMALL_BYTES = 1 << 20           # below this, fused XLA sigmoid wins
_DEFAULT_TILE_BYTES = 8 << 20    # safe everywhere (v7x has 64 MiB VMEM)
_DEFAULT_VMEM_LIMIT = 40 << 20
_MAX_TILE_BYTES = 16 << 20


def _round_up(x, m):
    return ((x + m - 1) // m) * m


def _sigmoid_kernel(x_ref, o_ref):
    # Exact reference formulation 1 / (1 + exp(-x)).  The kernel is purely
    # HBM-bound, so the exact divide is free (hidden under the DMA) — no
    # approximate reciprocal.  f32 compute (mandatory on v5e, cheap elsewhere).
    x = x_ref[...].astype(jnp.float32)
    o_ref[...] = (1.0 / (1.0 + jnp.exp(-x))).astype(o_ref.dtype)


def _vmem_budget():
    """Generation-aware tile / VMEM-limit sizing (v5e/v6e: 128 MiB, v7x: 64 MiB)."""
    tile_bytes = _DEFAULT_TILE_BYTES
    vmem_limit = _DEFAULT_VMEM_LIMIT
    try:
        vmem_cap = int(pltpu.get_tpu_info().vmem_capacity_bytes)
        # ~VMEM/8 per tile: 4 double-buffered in+out buffers = VMEM/2 worst
        # case, comfortably inside physical VMEM with headroom.
        tile_bytes = max(1 << 20, min(vmem_cap // 8, _MAX_TILE_BYTES))
        vmem_limit = max(32 << 20, min(vmem_cap * 3 // 4, 5 * tile_bytes))
    except Exception:
        # Interpret mode / older jax: keep conservative defaults.
        pass
    return tile_bytes, vmem_limit


def pallas_sigmoid(x, *, force_pallas=False):
    """Numerically matches NNModels.sigmoid: 1 / (1 + exp(-x))."""
    orig_shape = x.shape
    itemsize = jnp.dtype(x.dtype).itemsize

    if x.ndim == 0:
        return jax.nn.sigmoid(x)

    if not force_pallas and x.size * itemsize < _SMALL_BYTES:
        # Tiny tensors (e.g. the default 512x128 eval batch = 256 KiB):
        # standalone pallas_call launch/sequencing overhead dominates.
        return jax.nn.sigmoid(x)

    # Work on a 2-D [rows, features] view; elementwise sigmoid is
    # layout-agnostic so reshaping is free plumbing.
    if x.ndim == 1:
        x2 = x.reshape(1, -1)
    elif x.ndim == 2:
        x2 = x
    else:
        x2 = x.reshape(-1, orig_shape[-1])
    M, N = x2.shape

    tile_bytes, vmem_limit = _vmem_budget()
    row_bytes = N * itemsize

    if _SUBLANE * row_bytes <= tile_bytes:
        # Preferred: full feature width -> each block is one fully contiguous
        # HBM transfer (no row stride).  tn == N is exempt from the 128 rule.
        tn = N
        tm = max(_SUBLANE, (tile_bytes // row_bytes) // _SUBLANE * _SUBLANE)
        tm = min(tm, _round_up(M, _SUBLANE))
    else:
        # A single 8-row full-width band exceeds the budget: split the feature
        # axis into lane-aligned (multiple-of-128) chunks.
        tn = max(_LANE, (tile_bytes // (_SUBLANE * itemsize)) // _LANE * _LANE)
        tn = min(tn, _round_up(N, _LANE))
        tm = _SUBLANE

    if M < _SUBLANE:
        tm = M  # block equal to the full dim is exempt from the (8,128) rule

    # Megacore: if everything collapsed into a single block, split the row
    # axis so both v7x TensorCores get work (two concurrent DMA streams).
    if pl.cdiv(M, tm) * pl.cdiv(N, tn) == 1 and M > _SUBLANE:
        tm = _round_up(pl.cdiv(M, 2), _SUBLANE)

    grid = (pl.cdiv(M, tm), pl.cdiv(N, tn))

    out = pl.pallas_call(
        _sigmoid_kernel,
        out_shape=jax.ShapeDtypeStruct((M, N), x.dtype),
        grid=grid,
        in_specs=[pl.BlockSpec((tm, tn), lambda i, j: (i, j))],
        out_specs=pl.BlockSpec((tm, tn), lambda i, j: (i, j)),
        compiler_params=pltpu.CompilerParams(
            dimension_semantics=("parallel", "parallel"),
            vmem_limit_bytes=int(vmem_limit),
        ),
    )(x2)
    return out.reshape(orig_shape)


if __name__ == "__main__":
    key = jax.random.PRNGKey(0)
    # Shape consistent with the module's eval post-processing: one batch of
    # logits [batch_size, output_dim] (train_model's default batch_size=512).
    batch, output_dim = 512, 128
    x = jax.random.normal(key, (batch, output_dim), dtype=jnp.float32)

    # Reference: the exact definition from NNModels.sigmoid.
    y_ref = 1.0 / (1.0 + jnp.exp(-x))

    # 1) Default dispatch: small tensor takes the fused-XLA fast path.
    y_fast = jax.block_until_ready(pallas_sigmoid(x))
    assert y_fast.shape == y_ref.shape
    assert jnp.allclose(y_fast, y_ref, atol=1e-4, rtol=1e-4)

    # 2) Pallas kernel path (what large eval batches take).
    y_pallas = jax.block_until_ready(pallas_sigmoid(x, force_pallas=True))
    assert y_pallas.shape == y_ref.shape
    assert jnp.allclose(y_pallas, y_ref, atol=1e-4, rtol=1e-4), (
        float(jnp.max(jnp.abs(y_pallas - y_ref)))
    )

    print("KERNEL_OK")
</pallas_src>

<mosaic_0001>
module attributes {stable_mosaic.version = 11 : i64} {
  func.func @_sigmoid_kernel(%arg0: i32, %arg1: i32, %arg2: memref<256x128xf32, #tpu.memory_space<vmem>>, %arg3: memref<256x128xf32, #tpu.memory_space<vmem>>) attributes {dimension_semantics = [#tpu.dimension_semantics<parallel>, #tpu.dimension_semantics<parallel>], iteration_bounds = array<i64: 2, 1>, scalar_prefetch = 0 : i64, scratch_operands = 0 : i64, tpu.core_type = #tpu.core_type<tc>, window_params = [{transform_indices = @transform_0, window_bounds = array<i64: 256, 128>}, {transform_indices = @transform_1, window_bounds = array<i64: 256, 128>}]} {
    %c0 = arith.constant 0 : index
    %c0_0 = arith.constant 0 : index
    %0 = vector.load %arg2[%c0, %c0_0] : memref<256x128xf32, #tpu.memory_space<vmem>>, vector<256x128xf32>
    %cst = arith.constant 0.000000e+00 : f32
    %1 = vector.broadcast %cst : f32 to vector<256x128xf32>
    %2 = arith.subf %1, %0 : vector<256x128xf32>
    %3 = math.exp %2 : vector<256x128xf32>
    %cst_1 = arith.constant 1.000000e+00 : f32
    %4 = vector.broadcast %cst_1 : f32 to vector<256x128xf32>
    %5 = arith.addf %4, %3 : vector<256x128xf32>
    %cst_2 = arith.constant 1.000000e+00 : f32
    %6 = vector.broadcast %cst_2 : f32 to vector<256x128xf32>
    %7 = arith.divf %6, %5 : vector<256x128xf32>
    %c0_3 = arith.constant 0 : index
    %c0_4 = arith.constant 0 : index
    %8 = vector.load %arg3[%c0_3, %c0_4] : memref<256x128xf32, #tpu.memory_space<vmem>>, vector<256x128xf32>
    tpu.vector_store %arg3[%c0_3, %c0_4], %7 {strides = array<i32>} : memref<256x128xf32, #tpu.memory_space<vmem>>, vector<256x128xf32>,
    return
  }
  func.func @transform_0(%arg0: i32, %arg1: i32) -> (i32, i32) {
    %c0_i32 = arith.constant 0 : i32
    return %arg0, %arg1 : i32, i32
  }
  func.func @transform_1(%arg0: i32, %arg1: i32) -> (i32, i32) {
    %c0_i32 = arith.constant 0 : i32
    return %arg0, %arg1 : i32, i32
  }
}

</mosaic_0001>

<bundles_post_ra>
// kernel: tpu_custom_call.1
= control target key start
LH: loop header
LB: loop body
LE: loop exit
PB: predicated region body
PF: predicated region fallthrough
CT: control target
= control target key end

     0   :  { %6 = vsyncpa [#allocation3], 0  ;;  %s1099_s0 = inlined_call_operand.hbm [shape: f32[512,128], index: 0, kind: input, shape index: {}]   ;;  %s1100_s1 = inlined_call_operand.hbm [shape: f32[512,128], index: 1, kind: output, shape index: {}]  }
   0x1   :  { %8 = vsyncpa [#allocation3 + $0x1], 0 }
   0x2   :  { %9 = vsyncpa [#allocation4], 0 }
   0x3   :  { %11 = vsyncpa [#allocation4 + $0x1], 0  ;;  %s851_s6 = smov 0   ;;  %s853_s7 = smov 0  }
   0x4   :  { %s855_s8 = smov 0   ;;  %s857_s9 = smov 0  }
   0x5   :  { %s859_s10 = smov 0   ;;  %s861_s11 = smov 0  }
   0x6 LB: > { %s510_s12 = sadd.s32 4294967295, %s833_s11   ;;  %s511_s13 = sadd.s32 4294967294, %s833_s11   ;;  %s833_s11 = sphi %s861_s11, %s17_s11   ;;  %s829_s10 = sphi %s859_s10, %s1115_s10   ;;  %s825_s9 = sphi %s857_s9, %s1114_s9   ;;  %s821_s8 = sphi %s855_s8, %s1113_s8   ;;  %s817_s7 = sphi %s853_s7, %s1112_s7   ;;  %s813_s6 = sphi %s851_s6, %s1111_s6  }
   0x7   : > { %s29_s14 = sadd.s32 1, %s829_s10  ;;  %s38_s15 = sadd.s32 1, %s821_s8 }
   0x8   : > { %p31_p0 = scmp.ge.s32.totalorder %s29_s14, 2  ;;  %p45_p1 = scmp.ne.s32.totalorder %s821_s8, %s817_s7 }
   0x9   : > { %p46_p2 = scmp.eq.s32.totalorder %s833_s11, 0  ;;  %p51_p3 = scmp.ne.s32.totalorder %s817_s7, %s813_s6 }
   0xa   : > { %s1117_s14 = smov (%p31_p0, %s29_s14), 0  ;;  %p52_p5 = scmp.eq.s32.totalorder %s510_s12, 0 }
   0xb   : > { %p892_p4 = por %p46_p2, %p45_p1  ;;  %s33_s17 = ssub.s32 %s829_s10, %s1117_s14 }
   0xc   : > { %p77_p6 = scmp.eq.s32.totalorder %s510_s12, 1  ;;  %p36_p7 = scmp.eq.s32.totalorder %s33_s17, 0 }
   0xd   : > { %p898_p8 = por %p52_p5, %p51_p3  ;;  %p83_p10 = scmp.eq.s32.totalorder %s511_s13, 1 }
   0xe   : > { %p902_p9 = por %p77_p6, %p45_p1  ;;  %p539_p13 = scmp.lt.s32.totalorder %s833_s11, 2 }
   0xf   : > { %s907_s20 = scalar_select %p36_p7, %s821_s8, %s38_s15  }
  0x10   : > { %s1104_s19 = scalar_select %p902_p9, 1, 0 }
  0x11   : > { %p909_p11 = por %p83_p10, %p51_p3  ;;  %s103_s22 = sand.u32 1, %s821_s8  }
  0x12   : > { %s514_s23 = sshll.u32 %s103_s22, 8  ;;  %s525_s24 = sshll.u32 %s829_s10, 12 }
  0x13   : > { %s1105_s21 = scalar_select %p909_p11, 1, 0 }
  0x14   : > { %s920_s27 = scalar_lea.hbm %s1099_s0, %s525_s24  ;;  %s107_s28 = scalar_lea.vmem [#allocation2], %s514_s23 }
  0x15   : > { %s115_s29 = sshll.u32 %s107_s28, 4  ;;  %p926_p0 = pnand %p539_p13, %p892_p4  ;;  %s922_s29 = int_to_ptr.vmem [resolvable:$true] %s115_s29 }
  0x16   : > { %s931_s2 = scalar_lea.sflag [#allocation3], %s103_s22  ;;  %s721_s3 = scalar_lea.hbm %s920_s27, 4096 }
  0x17   : > { %p722_p2 = scmp.ne.s32.totalorder %s920_s27, %s721_s3  ;;  %p723_p3 = pneg %p926_p0 }
  0x18   : > { %s726_s12 = scalar_lea.hbm %s1099_s0, 8192  ;;  %p727_p4 = scmp.lt.u32.totalorder %s920_s27, %s1099_s0 }
  0x19   : > { %p724_p5 = pnand %p723_p3, %p722_p2  ;;  %p728_p7 = scmp.lt.u32.totalorder %s726_s12, %s721_s3 }
  0x1a   : > { %p730_p13 = scmp.lt.u32.totalorder %s721_s3, %s920_s27 }
  0x1b   : > { %p725_p6 = pneg %p724_p5  ;;  %p729_p10 = por %p728_p7, %p727_p4 }
  0x1d   : > { %p731_p12 = por %p730_p13, %p729_p10 }
  0x1f   : > { %p732_p1 = pnand %p731_p12, %p725_p6 }
  0x21   : > { %735 = shalt.err (!%p732_p1)
}
  0x22   : > { %s736_s16 = scalar_lea.vmem %s922_s29, 4096  ;;  %s835_s17 = smov [#allocation2]  }
  0x23   : > { %p737_p2 = scmp.ne.s32.totalorder %s922_s29, %s736_s16  ;;  %s741_s22 = sshll.u32 %s835_s17, 4  ;;  %s742_s22 = int_to_ptr.vmem [resolvable:$false] %s741_s22 }
  0x24   : > { %s743_s23 = scalar_lea.vmem %s742_s22, 8192  ;;  %p744_p9 = scmp.lt.s32.totalorder %s922_s29, %s742_s22 }
  0x25   : > { %p739_p5 = pnand %p737_p2, %p723_p3  ;;  %p745_p4 = scmp.lt.s32.totalorder %s743_s23, %s736_s16 }
  0x27   : > { %p740_p11 = pneg %p739_p5  ;;  %p746_p7 = por %p745_p4, %p744_p9 }
  0x29   : > { %p747_p10 = pnand %p746_p7, %p740_p11 }
  0x2b   : > { %750 = shalt.err (!%p747_p10)
}
  0x2c   : > { %s836_s24 = smov 128   ;;  %s837_s25 = smov 8  }
  0x2d   : > { %534 = dma.hbm_to_vmem [thread:$0]  (!%p926_p0), %s920_s27, 4096, %s922_s29, %s931_s2, %s836_s24, %s836_s24, %s837_s25  }
  0x2e   : > { %p123_p12 = scmp.lt.s32.totalorder %s833_s11, 3  ;;  %p1107_p1 = scmp.ge.s32.totalorder %s833_s11, 1 }
  0x30   : > { %p124_p3 = pnand %p1107_p1, %p123_p12 }
  0x31   : > { %s963_s26 = sand.u32 (!%p124_p3), 1, %s817_s7  }
  0x32   : > { %127 = sbr.rel (%p124_p3) target bundleno = 159 (0x9f), region = 24  ;;  %s518_s28 = sshll.u32 (!%p124_p3), %s963_s26, 8 }
  0x33   : > { %s130_s3 = scalar_lea.sflag (!%p124_p3), [#allocation3], %s963_s26  ;;  %s969_s4 = scalar_lea.vmem (!%p124_p3), [#allocation2], %s518_s28 }
  0x39   : > { %804 = dma.done.wait (%p898_p8), %s130_s3, 4096  }
  0x3a   : > { %806 = vsyncadd (%p898_p8), %s130_s3, 4294963200  ;;  %v154_v0 = vld [vmem:[%s969_s4] sm:$0xff]  ;;  %v155_v1 = vld [vmem:[%s969_s4 + $0x8] sm:$0xff]  ;;  %s999_s18 = scalar_lea.vmem [#allocation5], %s518_s28  ;;  %s526_s27 = sshll.u32 %s825_s9, 12 }
  0x3b   : > { %v156_v2 = vld [vmem:[%s969_s4 + $0x10] sm:$0xff]  ;;  %v186_v3 = vsub.f32 0.0, %v154_v0  ;;  %v187_v4 = vsub.f32 0.0, %v155_v1  ;;  %v157_v6 = vld [vmem:[%s969_s4 + $0x18] sm:$0xff]  ;;  %v158_v7 = vld [vmem:[%s969_s4 + $0x20] sm:$0xff]  ;;  %s425_s29 = sshll.u32 %s999_s18, 4  ;;  %s1045_s5 = scalar_lea.hbm %s1100_s1, %s526_s27  ;;  %s1047_s29 = int_to_ptr.vmem [resolvable:$true] %s425_s29 }
  0x3c   : > { %v188_v5 = vsub.f32 0.0, %v156_v2  ;;  %v159_v8 = vld [vmem:[%s969_s4 + $0x28] sm:$0xff]  ;;  %v189_v9 = vsub.f32 0.0, %v157_v6  ;;  %v190_v10 = vsub.f32 0.0, %v158_v7  ;;  %v160_v12 = vld [vmem:[%s969_s4 + $0x30] sm:$0xff]  ;;  %v161_v13 = vld [vmem:[%s969_s4 + $0x38] sm:$0xff] }
  0x3d   : > { %v191_v11 = vsub.f32 0.0, %v159_v8  ;;  %v162_v14 = vld [vmem:[%s969_s4 + $0x40] sm:$0xff]  ;;  %v218_v15 = vmul.f32 1.442695, %v186_v3  ;;  %v220_v16 = vmul.f32 1.442695, %v187_v4 }
  0x3e   : > { %v222_v17 = vmul.f32 1.442695, %v188_v5  ;;  %v224_v18 = vmul.f32 1.442695, %v189_v9  ;;  %v226_v19 = vmul.f32 1.442695, %v190_v10 }
  0x3f   : > { %593 = vpow2.f32 %v218_v15  ;;  %v192_v20 = vsub.f32 0.0, %v160_v12  ;;  %v193_v21 = vsub.f32 0.0, %v161_v13  ;;  %v194_v22 = vsub.f32 0.0, %v162_v14  ;;  %v163_v23 = vld [vmem:[%s969_s4 + $0x48] sm:$0xff]  ;;  %v164_v24 = vld [vmem:[%s969_s4 + $0x50] sm:$0xff]  ;;  %v165_v25 = vld [vmem:[%s969_s4 + $0x58] sm:$0xff] }
  0x40   : > { %595 = vpow2.f32 %v220_v16  ;;  %v228_v26 = vmul.f32 1.442695, %v191_v11  ;;  %v195_v27 = vsub.f32 0.0, %v163_v23  ;;  %v166_v28 = vld [vmem:[%s969_s4 + $0x60] sm:$0xff]  ;;  %v196_v30 = vsub.f32 0.0, %v164_v24  ;;  %v167_v50 = vld [vmem:[%s969_s4 + $0x68] sm:$0xff] }
  0x41   : > { %597 = vpow2.f32 %v222_v17  ;;  %v230_v29 = vmul.f32 1.442695, %v192_v20  ;;  %v232_v31 = vmul.f32 1.442695, %v193_v21  ;;  %v197_v32 = vsub.f32 0.0, %v165_v25  ;;  %v168_v53 = vld [vmem:[%s969_s4 + $0x70] sm:$0xff] }
  0x42   : > { %599 = vpow2.f32 %v224_v18  ;;  %v234_v33 = vmul.f32 1.442695, %v194_v22  ;;  %v198_v34 = vsub.f32 0.0, %v166_v28  ;;  %v236_v35 = vmul.f32 1.442695, %v195_v27  ;;  %v169_v56 = vld [vmem:[%s969_s4 + $0x78] sm:$0xff] }
  0x43   : > { %601 = vpow2.f32 %v226_v19  ;;  %v238_v36 = vmul.f32 1.442695, %v196_v30  ;;  %v240_v37 = vmul.f32 1.442695, %v197_v32  ;;  %v199_v59 = vsub.f32 0.0, %v167_v50  ;;  %v170_v60 = vld [vmem:[%s969_s4 + $0x80] sm:$0xff] }
  0x44   : > { %603 = vpow2.f32 %v228_v26  ;;  %v242_v38 = vmul.f32 1.442695, %v198_v34  ;;  %v200_v63 = vsub.f32 0.0, %v168_v53  ;;  %v171_v0 = vld [vmem:[%s969_s4 + $0x88] sm:$0xff]  ;;  %v201_v3 = vsub.f32 0.0, %v169_v56  ;;  %v172_v4 = vld [vmem:[%s969_s4 + $0x90] sm:$0xff] }
  0x45   : > { %605 = vpow2.f32 %v230_v29  ;;  %v202_v7 = vsub.f32 0.0, %v170_v60  ;;  %v173_v8 = vld [vmem:[%s969_s4 + $0x98] sm:$0xff]  ;;  %v244_v11 = vmul.f32 1.442695, %v199_v59  ;;  %v203_v12 = vsub.f32 0.0, %v171_v0  ;;  %v174_v13 = vld [vmem:[%s969_s4 + $0xa0] sm:$0xff] }
  0x46   : > { %607 = vpow2.f32 %v232_v31  ;;  %v246_v16 = vmul.f32 1.442695, %v200_v63  ;;  %v204_v17 = vsub.f32 0.0, %v172_v4  ;;  %v175_v18 = vld [vmem:[%s969_s4 + $0xa8] sm:$0xff]  ;;  %v248_v20 = vmul.f32 1.442695, %v201_v3 }
  0x47   : > { %609 = vpow2.f32 %v234_v33  ;;  %v205_v21 = vsub.f32 0.0, %v173_v8  ;;  %v176_v22 = vld [vmem:[%s969_s4 + $0xb0] sm:$0xff]  ;;  %v250_v24 = vmul.f32 1.442695, %v202_v7  ;;  %v206_v25 = vsub.f32 0.0, %v174_v13  ;;  %v177_v26 = vld [vmem:[%s969_s4 + $0xb8] sm:$0xff] }
  0x48   : > { %611 = vpow2.f32 %v236_v35  ;;  %v252_v28 = vmul.f32 1.442695, %v203_v12  ;;  %v207_v29 = vsub.f32 0.0, %v175_v18  ;;  %v178_v30 = vld [vmem:[%s969_s4 + $0xc0] sm:$0xff]  ;;  %v254_v32 = vmul.f32 1.442695, %v204_v17 }
  0x49   : > { %v594_v39 = vpop.eup %593  ;;  %613 = vpow2.f32 %v238_v36  ;;  %v208_v33 = vsub.f32 0.0, %v176_v22  ;;  %v179_v34 = vld [vmem:[%s969_s4 + $0xc8] sm:$0xff]  ;;  %v256_v36 = vmul.f32 1.442695, %v205_v21  ;;  %v180_v0 = vld [vmem:[%s969_s4 + $0xd0] sm:$0xff]  ;;  %v181_v3 = vld [vmem:[%s969_s4 + $0xd8] sm:$0xff] }
  0x4a   : > { %v596_v40 = vpop.eup %595  ;;  %v282_v41 = vadd.f32 1.0, %v594_v39  ;;  %615 = vpow2.f32 %v240_v37  ;;  %v209_v37 = vsub.f32 0.0, %v177_v26  ;;  %v258_v39 = vmul.f32 1.442695, %v206_v25  ;;  %v185_v18 = vld [vmem:[%s969_s4 + $0xf8] sm:$0xff]  ;;  %s411_s9 = scalar_lea.sflag [#allocation4], %s963_s26 }
  0x4b   : > { %v598_v42 = vpop.eup %597  ;;  %v283_v43 = vadd.f32 1.0, %v596_v40  ;;  %617 = vpow2.f32 %v242_v38  ;;  %v210_v40 = vsub.f32 0.0, %v178_v30  ;;  %v213_v13 = vsub.f32 0.0, %v181_v3  ;;  %s751_s12 = scalar_lea.vmem %s1047_s29, 4096  ;;  %p1108_p9 = scmp.ne.s32.totalorder %s1104_s19, 0 }
  0x4c   : > { %v600_v44 = vpop.eup %599  ;;  %619 = vrcp.f32 %v282_v41  ;;  %v284_v45 = vadd.f32 1.0, %v598_v42  ;;  %v260_v42 = vmul.f32 1.442695, %v207_v29  ;;  %v217_v29 = vsub.f32 0.0, %v185_v18  ;;  %p752_p8 = scmp.ne.s32.totalorder %s1047_s29, %s751_s12  ;;  %s838_s13 = smov [#allocation5]  }
  0x4d   : > { %v602_v46 = vpop.eup %601  ;;  %621 = vrcp.f32 %v283_v43  ;;  %v285_v47 = vadd.f32 1.0, %v600_v44  ;;  %v211_v43 = vsub.f32 0.0, %v179_v34  ;;  %s755_s15 = sshll.u32 %s838_s13, 4  ;;  %s756_s15 = int_to_ptr.vmem [resolvable:$false] %s755_s15 }
  0x4e   : > { %v604_v48 = vpop.eup %603  ;;  %623 = vrcp.f32 %v284_v45  ;;  %v286_v49 = vadd.f32 1.0, %v602_v46  ;;  %v262_v45 = vmul.f32 1.442695, %v208_v33  ;;  %p753_p11 = pnand %p752_p8, %p1108_p9  ;;  %s757_s16 = scalar_lea.vmem %s756_s15, 8192 }
  0x4f   : > { %v606_v51 = vpop.eup %605  ;;  %625 = vrcp.f32 %v285_v47  ;;  %v287_v52 = vadd.f32 1.0, %v604_v48  ;;  %v264_v47 = vmul.f32 1.442695, %v209_v37  ;;  %v280_v37 = vmul.f32 1.442695, %v217_v29  ;;  %p758_p6 = scmp.lt.s32.totalorder %s1047_s29, %s756_s15  ;;  %p759_p13 = scmp.lt.s32.totalorder %s757_s16, %s751_s12 }
  0x50   : > { %v608_v54 = vpop.eup %607  ;;  %627 = vrcp.f32 %v286_v49  ;;  %v288_v55 = vadd.f32 1.0, %v606_v51  ;;  %v266_v49 = vmul.f32 1.442695, %v210_v40  ;;  %v268_v51 = vmul.f32 1.442695, %v211_v43  ;;  %p754_p0 = pneg %p753_p11 }
  0x51   : > { %v610_v57 = vpop.eup %609  ;;  %629 = vrcp.f32 %v287_v52  ;;  %v289_v58 = vadd.f32 1.0, %v608_v54  ;;  %p760_p2 = por %p759_p13, %p758_p6 }
  0x52   : > { %v612_v61 = vpop.eup %611  ;;  %631 = vrcp.f32 %v288_v55  ;;  %v290_v62 = vadd.f32 1.0, %v610_v57 }
  0x53   : > { %v614_v1 = vpop.eup %613  ;;  %633 = vrcp.f32 %v289_v58  ;;  %v291_v2 = vadd.f32 1.0, %v612_v61  ;;  %p761_p5 = pnand %p760_p2, %p754_p0 }
  0x54   : > { %v616_v5 = vpop.eup %615  ;;  %635 = vrcp.f32 %v290_v62  ;;  %v292_v6 = vadd.f32 1.0, %v614_v1 }
  0x55   : > { %v618_v9 = vpop.eup %617  ;;  %637 = vrcp.f32 %v291_v2  ;;  %v293_v10 = vadd.f32 1.0, %v616_v5 }
  0x56   : > { %v620_v14 = vpop.eup %619  ;;  %639 = vrcp.f32 %v292_v6  ;;  %v294_v15 = vadd.f32 1.0, %v618_v9  ;;  %v182_v6 = vld [vmem:[%s969_s4 + $0xe0] sm:$0xff]  ;;  %v212_v9 = vsub.f32 0.0, %v180_v0 }
  0x57   : > { %v622_v19 = vpop.eup %621  ;;  %378 = vst [vmem:[%s999_s18] sm:$0xff] %v620_v14  ;;  %641 = vrcp.f32 %v293_v10  ;;  %v183_v10 = vld [vmem:[%s969_s4 + $0xe8] sm:$0xff]  ;;  %v184_v14 = vld [vmem:[%s969_s4 + $0xf0] sm:$0xff]  ;;  %v214_v17 = vsub.f32 0.0, %v182_v6 }
  0x58   : > { %v624_v23 = vpop.eup %623  ;;  %379 = vst [vmem:[%s999_s18 + $0x8] sm:$0xff] %v622_v19  ;;  %643 = vrcp.f32 %v294_v15  ;;  %v215_v21 = vsub.f32 0.0, %v183_v10  ;;  %v216_v25 = vsub.f32 0.0, %v184_v14 }
  0x59   : > { %v626_v27 = vpop.eup %625  ;;  %380 = vst [vmem:[%s999_s18 + $0x10] sm:$0xff] %v624_v23  ;;  %645 = vpow2.f32 %v244_v11 }
  0x5a   : > { %v628_v31 = vpop.eup %627  ;;  %381 = vst [vmem:[%s999_s18 + $0x18] sm:$0xff] %v626_v27  ;;  %647 = vpow2.f32 %v246_v16  ;;  %v276_v33 = vmul.f32 1.442695, %v215_v21 }
  0x5b   : > { %v630_v35 = vpop.eup %629  ;;  %382 = vst [vmem:[%s999_s18 + $0x20] sm:$0xff] %v628_v31  ;;  %649 = vpow2.f32 %v248_v20  ;;  %v274_v31 = vmul.f32 1.442695, %v214_v17 }
  0x5c   : > { %v632_v38 = vpop.eup %631  ;;  %383 = vst [vmem:[%s999_s18 + $0x28] sm:$0xff] %v630_v35  ;;  %651 = vpow2.f32 %v250_v24  ;;  %v270_v24 = vmul.f32 1.442695, %v212_v9  ;;  %v278_v35 = vmul.f32 1.442695, %v216_v25 }
  0x5d   : > { %v634_v41 = vpop.eup %633  ;;  %384 = vst [vmem:[%s999_s18 + $0x30] sm:$0xff] %v632_v38  ;;  %653 = vpow2.f32 %v252_v28  ;;  %v272_v28 = vmul.f32 1.442695, %v213_v13 }
  0x5e   : > { %v636_v44 = vpop.eup %635  ;;  %385 = vst [vmem:[%s999_s18 + $0x38] sm:$0xff] %v634_v41  ;;  %655 = vpow2.f32 %v254_v32 }
  0x5f   : > { %v638_v46 = vpop.eup %637  ;;  %386 = vst [vmem:[%s999_s18 + $0x40] sm:$0xff] %v636_v44  ;;  %657 = vpow2.f32 %v256_v36 }
  0x60   : > { %v640_v48 = vpop.eup %639  ;;  %387 = vst [vmem:[%s999_s18 + $0x48] sm:$0xff] %v638_v46  ;;  %659 = vpow2.f32 %v258_v39 }
  0x61   : > { %v642_v50 = vpop.eup %641  ;;  %388 = vst [vmem:[%s999_s18 + $0x50] sm:$0xff] %v640_v48  ;;  %661 = vpow2.f32 %v260_v42 }
  0x62   : > { %v644_v52 = vpop.eup %643  ;;  %389 = vst [vmem:[%s999_s18 + $0x58] sm:$0xff] %v642_v50  ;;  %663 = vpow2.f32 %v262_v45 }
  0x63   : > { %v646_v53 = vpop.eup %645  ;;  %390 = vst [vmem:[%s999_s18 + $0x60] sm:$0xff] %v644_v52  ;;  %665 = vpow2.f32 %v264_v47 }
  0x64   : > { %v648_v54 = vpop.eup %647  ;;  %v295_v55 = vadd.f32 1.0, %v646_v53  ;;  %667 = vpow2.f32 %v266_v49 }
  0x65   : > { %v650_v56 = vpop.eup %649  ;;  %v296_v57 = vadd.f32 1.0, %v648_v54  ;;  %669 = vpow2.f32 %v268_v51 }
  0x66   : > { %v652_v58 = vpop.eup %651  ;;  %671 = vrcp.f32 %v295_v55  ;;  %v297_v59 = vadd.f32 1.0, %v650_v56 }
  0x67   : > { %v654_v60 = vpop.eup %653  ;;  %673 = vrcp.f32 %v296_v57  ;;  %v298_v61 = vadd.f32 1.0, %v652_v58 }
  0x68   : > { %v656_v62 = vpop.eup %655  ;;  %675 = vrcp.f32 %v297_v59  ;;  %v299_v63 = vadd.f32 1.0, %v654_v60 }
  0x69   : > { %v658_v1 = vpop.eup %657  ;;  %677 = vrcp.f32 %v298_v61  ;;  %v300_v2 = vadd.f32 1.0, %v656_v62 }
  0x6a   : > { %v660_v4 = vpop.eup %659  ;;  %679 = vrcp.f32 %v299_v63  ;;  %v301_v5 = vadd.f32 1.0, %v658_v1 }
  0x6b   : > { %v662_v7 = vpop.eup %661  ;;  %681 = vrcp.f32 %v300_v2  ;;  %v302_v8 = vadd.f32 1.0, %v660_v4 }
  0x6c   : > { %v664_v11 = vpop.eup %663  ;;  %683 = vrcp.f32 %v301_v5  ;;  %v303_v12 = vadd.f32 1.0, %v662_v7 }
  0x6d   : > { %v666_v15 = vpop.eup %665  ;;  %685 = vrcp.f32 %v302_v8  ;;  %v304_v16 = vadd.f32 1.0, %v664_v11 }
  0x6e   : > { %v668_v19 = vpop.eup %667  ;;  %687 = vrcp.f32 %v303_v12  ;;  %v305_v20 = vadd.f32 1.0, %v666_v15 }
  0x6f   : > { %v670_v22 = vpop.eup %669  ;;  %689 = vrcp.f32 %v304_v16  ;;  %v306_v23 = vadd.f32 1.0, %v668_v19 }
  0x70   : > { %v672_v26 = vpop.eup %671  ;;  %691 = vrcp.f32 %v305_v20  ;;  %v307_v27 = vadd.f32 1.0, %v670_v22 }
  0x71   : > { %v674_v30 = vpop.eup %673  ;;  %391 = vst [vmem:[%s999_s18 + $0x68] sm:$0xff] %v672_v26  ;;  %693 = vrcp.f32 %v306_v23 }
  0x72   : > { %v676_v32 = vpop.eup %675  ;;  %392 = vst [vmem:[%s999_s18 + $0x70] sm:$0xff] %v674_v30  ;;  %695 = vrcp.f32 %v307_v27 }
  0x73   : > { %v678_v34 = vpop.eup %677  ;;  %393 = vst [vmem:[%s999_s18 + $0x78] sm:$0xff] %v676_v32  ;;  %697 = vpow2.f32 %v270_v24 }
  0x74   : > { %v680_v36 = vpop.eup %679  ;;  %394 = vst [vmem:[%s999_s18 + $0x80] sm:$0xff] %v678_v34  ;;  %699 = vpow2.f32 %v272_v28 }
  0x75   : > { %v682_v38 = vpop.eup %681  ;;  %395 = vst [vmem:[%s999_s18 + $0x88] sm:$0xff] %v680_v36  ;;  %701 = vpow2.f32 %v274_v31 }
  0x76   : > { %v684_v39 = vpop.eup %683  ;;  %396 = vst [vmem:[%s999_s18 + $0x90] sm:$0xff] %v682_v38  ;;  %703 = vpow2.f32 %v276_v33 }
  0x77   : > { %v686_v40 = vpop.eup %685  ;;  %397 = vst [vmem:[%s999_s18 + $0x98] sm:$0xff] %v684_v39  ;;  %705 = vpow2.f32 %v278_v35 }
  0x78   : > { %v688_v41 = vpop.eup %687  ;;  %398 = vst [vmem:[%s999_s18 + $0xa0] sm:$0xff] %v686_v40  ;;  %707 = vpow2.f32 %v280_v37 }
  0x79   : > { %v690_v42 = vpop.eup %689  ;;  %399 = vst [vmem:[%s999_s18 + $0xa8] sm:$0xff] %v688_v41 }
  0x7a   : > { %v692_v43 = vpop.eup %691  ;;  %400 = vst [vmem:[%s999_s18 + $0xb0] sm:$0xff] %v690_v42 }
  0x7b   : > { %v694_v44 = vpop.eup %693  ;;  %401 = vst [vmem:[%s999_s18 + $0xb8] sm:$0xff] %v692_v43 }
  0x7c   : > { %v696_v45 = vpop.eup %695  ;;  %402 = vst [vmem:[%s999_s18 + $0xc0] sm:$0xff] %v694_v44 }
  0x7d   : > { %v698_v46 = vpop.eup %697  ;;  %403 = vst [vmem:[%s999_s18 + $0xc8] sm:$0xff] %v696_v45 }
  0x7e   : > { %v700_v47 = vpop.eup %699  ;;  %v308_v48 = vadd.f32 1.0, %v698_v46 }
  0x7f   : > { %v702_v49 = vpop.eup %701  ;;  %v309_v50 = vadd.f32 1.0, %v700_v47 }
  0x80   : > { %v704_v51 = vpop.eup %703  ;;  %709 = vrcp.f32 %v308_v48  ;;  %v310_v52 = vadd.f32 1.0, %v702_v49 }
  0x81   : > { %v706_v53 = vpop.eup %705  ;;  %711 = vrcp.f32 %v309_v50  ;;  %v311_v54 = vadd.f32 1.0, %v704_v51 }
  0x82   : > { %v708_v55 = vpop.eup %707  ;;  %713 = vrcp.f32 %v310_v52  ;;  %v312_v56 = vadd.f32 1.0, %v706_v53 }
  0x83   : > { %715 = vrcp.f32 %v311_v54  ;;  %v313_v57 = vadd.f32 1.0, %v708_v55 }
  0x84   : > { %717 = vrcp.f32 %v312_v56 }
  0x85   : > { %719 = vrcp.f32 %v313_v57 }
  0x8a   : > { %v710_v58 = vpop.eup %709 }
  0x8b   : > { %v712_v59 = vpop.eup %711  ;;  %404 = vst [vmem:[%s999_s18 + $0xd0] sm:$0xff] %v710_v58 }
  0x8c   : > { %v714_v60 = vpop.eup %713  ;;  %405 = vst [vmem:[%s999_s18 + $0xd8] sm:$0xff] %v712_v59 }
  0x8d   : > { %v716_v61 = vpop.eup %715  ;;  %406 = vst [vmem:[%s999_s18 + $0xe0] sm:$0xff] %v714_v60 }
  0x8e   : > { %v718_v62 = vpop.eup %717  ;;  %407 = vst [vmem:[%s999_s18 + $0xe8] sm:$0xff] %v716_v61 }
  0x8f   : > { %v720_v63 = vpop.eup %719  ;;  %408 = vst [vmem:[%s999_s18 + $0xf0] sm:$0xff] %v718_v62 }
  0x90   : > { %409 = vst [vmem:[%s999_s18 + $0xf8] sm:$0xff] %v720_v63 }
  0x91   : > { %764 = shalt.err (!%p761_p5)
}
  0x92   : > { %s765_s17 = scalar_lea.hbm %s1045_s5, 4096  ;;  %s769_s24 = scalar_lea.hbm %s1100_s1, 8192 }
  0x93   : > { %p766_p4 = scmp.ne.s32.totalorder %s1045_s5, %s765_s17  ;;  %p770_p12 = scmp.lt.u32.totalorder %s1045_s5, %s1100_s1 }
  0x94   : > { %p771_p1 = scmp.lt.u32.totalorder %s769_s24, %s765_s17  ;;  %p773_p8 = scmp.lt.u32.totalorder %s765_s17, %s1045_s5 }
  0x95   : > { %p767_p7 = pnand %p766_p4, %p1108_p9 }
  0x96   : > { %p772_p3 = por %p771_p1, %p770_p12 }
  0x97   : > { %p768_p10 = pneg %p767_p7 }
  0x98   : > { %p774_p11 = por %p773_p8, %p772_p3 }
  0x9a   : > { %p775_p0 = pnand %p774_p11, %p768_p10 }
  0x9c   : > { %778 = shalt.err (!%p775_p0)
}
  0x9d   : > { %s839_s3 = smov 128   ;;  %s840_s4 = smov 8  }
  0x9e   : > { %529 = dma.vmem_to_hbm [thread:$0]  (%p1108_p9), %s1047_s29, 4096, %s1045_s5, %s411_s9, %s839_s3, %s839_s3, %s840_s4  }
  0x9f PF: > { %s440_s18 = sand.u32 1, %s813_s6   ;;  %p1109_p6 = scmp.ne.s32.totalorder %s1105_s21, 0 }
  0xa0   : > { %p1110_p13 = scmp.ge.s32.totalorder %s833_s11, 2  ;;  %s441_s27 = scalar_lea.sflag [#allocation4], %s440_s18 }
  0xa2   : > { %p536_p2 = pnand %p1110_p13, %p1109_p6 }
  0xa4   : > { %808 = dma.done.wait (!%p536_p2), %s441_s27, 4096  }
  0xa5   : > { %810 = vsyncadd (!%p536_p2), %s441_s27, 4294963200  ;;  %s17_s11 = sadd.s32 1, %s833_s11   ;;  %s1111_s6 = smov %s817_s7 }
  0xa6   : > { %p14_p5 = scmp.ge.s32.totalorder %s17_s11, 4   ;;  %s1112_s7 = smov %s821_s8 }
  0xa7   : > { %s1113_s8 = smov %s907_s20  ;;  %s1114_s9 = smov %s829_s10 }
  0xa8   : > { %s1115_s10 = smov %s1117_s14  ;;  %16 = sbr.rel (!%p14_p5) target bundleno = 6 (0x6), region = 69 }
  0xaf   :  { %446 = vsyncpa [#allocation3], 1 }
  0xb0   :  { %448 = vsyncpa [#allocation3 + $0x1], 1 }
  0xb1   :  { %449 = vsyncpa [#allocation4], 1 }
  0xb2   :  { %451 = vsyncpa [#allocation4 + $0x1], 1 }

</bundles_post_ra>
